<compile_context>
chip_gen: v5e
topology: v5e:2x2
jax: 0.10.0
libtpu: 0.0.40
codegen_flags: <defaults>
</compile_context>

<pallas_src>
import math

import jax
import jax.numpy as jnp
from jax import lax
from jax.experimental import pallas as pl
from jax.experimental.pallas import tpu as pltpu


# ---------------------------------------------------------------------------
# Tiling helpers
# ---------------------------------------------------------------------------
def _round_up(x, m):
    return ((x + m - 1) // m) * m


def _pick_row_tile(m, row_bytes, tm_max, *, extra_bytes=0,
                   vmem_budget=24 << 20, num_tensorcores=1):
    """Pick a row (token) tile.

    - as large as possible (<= tm_max, multiple of 8) to amortize per-step
      overhead on these HBM-bound kernels,
    - keep the double-buffered per-step footprint under `vmem_budget`
      (conservative for v7x's 64 MiB VMEM; v5e/v6e have more headroom),
    - only force a multi-tile split when num_tensorcores > 1 (v7x); on
      single-TC chips a whole-problem tile is the cheapest option.
    """
    tm = min(tm_max, _round_up(m, 8))
    if num_tensorcores > 1 and m <= tm and m >= 8 * num_tensorcores:
        # v7x: give every TensorCore a (roughly even) tile of work.
        tm = _round_up(pl.cdiv(m, num_tensorcores), 8)
    tm = max(8, _round_up(tm, 8))
    while tm > 8 and (2 * tm * row_bytes + extra_bytes) > vmem_budget:
        tm = max(8, _round_up(tm // 2, 8))
    return tm


def _vmem_limit(footprint_bytes, *, headroom=8 << 20, floor=32 << 20, cap=56 << 20):
    """Explicit scoped-VMEM limit: footprint + headroom, never below the
    v6e/v7x default (32 MiB), never above a v7x-safe 56 MiB."""
    return int(min(max(footprint_bytes + headroom, floor), cap))


# ---------------------------------------------------------------------------
# Kernel bodies
# ---------------------------------------------------------------------------
def _nonorm_kernel(x_ref, params_ref, o_ref):
    # params_ref rows: 0 = weight (gamma), 1 = bias (beta)
    gamma = params_ref[0:1, :].astype(jnp.float32)
    beta = params_ref[1:2, :].astype(jnp.float32)
    o_ref[...] = (x_ref[...].astype(jnp.float32) * gamma + beta).astype(o_ref.dtype)


def _bottleneck_kernel(x_ref, w_ref, params_ref, res_ref, o_ref):
    # Plain [tm, K] @ [K, N] MXU matmul (W pre-transposed once in the wrapper).
    acc = jnp.dot(x_ref[...], w_ref[...], preferred_element_type=jnp.float32)
    # params_ref rows: 0 = dense bias, 1 = NoNorm weight, 2 = NoNorm bias
    bias = params_ref[0:1, :].astype(jnp.float32)
    gamma = params_ref[1:2, :].astype(jnp.float32)
    beta = params_ref[2:3, :].astype(jnp.float32)
    acc = (acc + bias + res_ref[...].astype(jnp.float32)) * gamma + beta
    # Dropout: eval-mode identity (hidden_dropout_prob not applied).
    # TODO(synk): training-mode dropout is not implemented in this kernel.
    o_ref[...] = acc.astype(o_ref.dtype)


# ---------------------------------------------------------------------------
# NoNorm (the spec module): y = x * weight + bias over the last axis
# ---------------------------------------------------------------------------
def nonorm(x, weight, bias, *, tm=2048, num_tensorcores=1):
    orig_shape = x.shape
    n = orig_shape[-1]
    m = math.prod(orig_shape[:-1]) if len(orig_shape) > 1 else 1
    x2 = x.reshape(m, n)
    params = jnp.stack([weight, bias]).astype(jnp.float32)   # (2, N), resident

    bpe = x2.dtype.itemsize
    out_bpe = jnp.dtype(x.dtype).itemsize
    row_bytes = n * (bpe + out_bpe)                     # streamed in + out per row
    extra = 2 * 2 * n * 4                               # resident params (2 bufs)
    tm = _pick_row_tile(m, row_bytes, tm, extra_bytes=extra,
                        num_tensorcores=num_tensorcores)

    grid_m = pl.cdiv(m, tm)                             # ragged last block is masked
    footprint = 2 * tm * row_bytes + extra

    cost = pl.CostEstimate(flops=2 * m * n, transcendentals=0,
                           bytes_accessed=m * n * (bpe + out_bpe) + 2 * n * 4)

    out = pl.pallas_call(
        _nonorm_kernel,
        out_shape=jax.ShapeDtypeStruct((m, n), x.dtype),
        grid_spec=pltpu.PrefetchScalarGridSpec(
            num_scalar_prefetch=0,
            grid=(grid_m,),
            in_specs=[
                pl.BlockSpec((tm, n), lambda i: (i, 0)),   # streamed input tile
                pl.BlockSpec((2, n), lambda i: (0, 0)),    # packed weight/bias
            ],
            out_specs=pl.BlockSpec((tm, n), lambda i: (i, 0)),
        ),
        compiler_params=pltpu.CompilerParams(
            dimension_semantics=("parallel",),
            vmem_limit_bytes=_vmem_limit(footprint)),
        cost_estimate=cost,
    )(x2, params)
    return out.reshape(orig_shape)


# ---------------------------------------------------------------------------
# Fused MobileBERT OutputBottleneck: NoNorm(dense(x) + residual)
# ---------------------------------------------------------------------------
def output_bottleneck(hidden_states, residual, w, b, gamma, beta, *,
                      tm=2048, compute_dtype=None, out_dtype=None,
                      num_tensorcores=1):
    """hidden_states: [B,S,K], residual: [B,S,N], w: [N,K] (torch Linear layout).

    compute_dtype (e.g. jnp.bfloat16) casts x / W / residual before streaming
    (valid on v5e/v6e/v7x MXUs); accumulation and gamma/beta math stay f32, so
    expect ~1e-2-level error vs a HIGHEST-precision f32 reference.
    out_dtype controls the streamed output dtype (defaults to the input dtype).
    """
    B, S, K = hidden_states.shape
    N, K2 = w.shape
    assert K2 == K
    M = B * S
    out_dtype = out_dtype or hidden_states.dtype

    x = hidden_states.reshape(M, K)
    res = residual.reshape(M, N)
    # One-time [N,K] -> [K,N] transpose (256 KiB for real MobileBERT sizes) so
    # the kernel's resident RHS needs no per-step transposed-matmul handling.
    w_t = jnp.transpose(w)
    if compute_dtype is not None:
        x = x.astype(compute_dtype)
        w_t = w_t.astype(compute_dtype)
        res = res.astype(compute_dtype)     # residual dominates streamed bytes
    params = jnp.stack([b, gamma, beta]).astype(jnp.float32)   # (3, N), resident

    bpe_x = x.dtype.itemsize
    bpe_w = w_t.dtype.itemsize
    bpe_r = res.dtype.itemsize
    bpe_o = jnp.dtype(out_dtype).itemsize
    row_bytes = K * bpe_x + N * (bpe_r + bpe_o)        # streamed bytes per token row
    extra = 2 * K * N * bpe_w + 2 * 3 * N * 4          # resident W + packed params
    tm = _pick_row_tile(M, row_bytes, tm, extra_bytes=extra,
                        num_tensorcores=num_tensorcores)

    grid_m = pl.cdiv(M, tm)                            # ragged last block is masked
    footprint = 2 * tm * row_bytes + extra

    cost = pl.CostEstimate(
        flops=2 * M * K * N,
        transcendentals=0,
        bytes_accessed=M * K * bpe_x + K * N * bpe_w
                       + M * N * (bpe_r + bpe_o) + 3 * N * 4)

    out = pl.pallas_call(
        _bottleneck_kernel,
        out_shape=jax.ShapeDtypeStruct((M, N), out_dtype),
        grid_spec=pltpu.PrefetchScalarGridSpec(
            num_scalar_prefetch=0,
            grid=(grid_m,),
            in_specs=[
                pl.BlockSpec((tm, K), lambda i: (i, 0)),   # x tile (streamed)
                pl.BlockSpec((K, N), lambda i: (0, 0)),    # W resident, [K,N]
                pl.BlockSpec((3, N), lambda i: (0, 0)),    # packed bias/gamma/beta
                pl.BlockSpec((tm, N), lambda i: (i, 0)),   # residual tile (streamed)
            ],
            out_specs=pl.BlockSpec((tm, N), lambda i: (i, 0)),
        ),
        compiler_params=pltpu.CompilerParams(
            dimension_semantics=("parallel",),
            vmem_limit_bytes=_vmem_limit(footprint)),
        cost_estimate=cost,
    )(x, w_t, params, res)
    return out.reshape(B, S, N)


# ---------------------------------------------------------------------------
# Pure-JAX references
# ---------------------------------------------------------------------------
def reference_nonorm(x, weight, bias):
    return x * weight + bias


def reference_bottleneck(hidden_states, residual, w, b, gamma, beta):
    dense = jnp.einsum("bsk,nk->bsn", hidden_states, w,
                       precision=lax.Precision.HIGHEST) + b
    return (dense + residual) * gamma + beta


if __name__ == "__main__":
    # Real MobileBERT feature sizes (lane-dense: multiples of 128), small B/S.
    B, S, K, N = 2, 128, 128, 512
    key = jax.random.PRNGKey(0)
    ks = jax.random.split(key, 10)

    # --- NoNorm (the spec module) ------------------------------------------
    x_in = jax.random.normal(ks[0], (B, S, N), dtype=jnp.float32)
    nn_weight = 1.0 + 0.1 * jax.random.normal(ks[1], (N,), dtype=jnp.float32)
    nn_bias = 0.1 * jax.random.normal(ks[2], (N,), dtype=jnp.float32)

    y = jax.block_until_ready(nonorm(x_in, nn_weight, nn_bias))
    y_ref = reference_nonorm(x_in, nn_weight, nn_bias)
    assert y.shape == x_in.shape
    assert jnp.allclose(y, y_ref, atol=1e-5, rtol=1e-5), "NoNorm mismatch"

    # --- NoNorm with ragged M (no wrapper pad/slice; Pallas masks last block)
    x_rag = jax.random.normal(ks[3], (3, 50, N), dtype=jnp.float32)
    y_rag = jax.block_until_ready(nonorm(x_rag, nn_weight, nn_bias))
    assert jnp.allclose(y_rag, reference_nonorm(x_rag, nn_weight, nn_bias),
                        atol=1e-5, rtol=1e-5), "ragged NoNorm mismatch"

    # --- Fused dense + residual + NoNorm (OutputBottleneck) -----------------
    hs = jax.random.normal(ks[4], (B, S, K), dtype=jnp.float32)
    res = jax.random.normal(ks[5], (B, S, N), dtype=jnp.float32)
    w = 0.02 * jax.random.normal(ks[6], (N, K), dtype=jnp.float32)   # dense.weight
    b = 0.02 * jax.random.normal(ks[7], (N,), dtype=jnp.float32)     # dense.bias

    out = jax.block_until_ready(output_bottleneck(hs, res, w, b, nn_weight, nn_bias))
    ref = reference_bottleneck(hs, res, w, b, nn_weight, nn_bias)
    assert out.shape == (B, S, N)
    assert jnp.allclose(out, ref, atol=1e-4, rtol=1e-4), "fused f32 mismatch"

    # --- Ragged-M fused path (masked last block, no extra HBM passes) -------
    B2, S2 = 3, 50
    hs2 = jax.random.normal(ks[8], (B2, S2, K), dtype=jnp.float32)
    res2 = jax.random.normal(ks[9], (B2, S2, N), dtype=jnp.float32)
    out2 = jax.block_until_ready(output_bottleneck(hs2, res2, w, b, nn_weight, nn_bias))
    ref2 = reference_bottleneck(hs2, res2, w, b, nn_weight, nn_bias)
    assert jnp.allclose(out2, ref2, atol=1e-4, rtol=1e-4), "ragged fused mismatch"

    # --- bf16 streaming (x / W / residual), f32 accumulate -------------------
    out_bf16 = jax.block_until_ready(
        output_bottleneck(hs, res, w, b, nn_weight, nn_bias,
                          compute_dtype=jnp.bfloat16))
    assert jnp.allclose(out_bf16, ref, atol=5e-2, rtol=5e-2), "bf16 mismatch"

    # --- v7x-style 2-TensorCore even split heuristic -------------------------
    out_2tc = jax.block_until_ready(
        output_bottleneck(hs, res, w, b, nn_weight, nn_bias, num_tensorcores=2))
    assert jnp.allclose(out_2tc, ref, atol=1e-4, rtol=1e-4), "2-TC split mismatch"

    print("KERNEL_OK")
</pallas_src>

<mosaic_0001>
module attributes {stable_mosaic.version = 11 : i64} {
  func.func @_nonorm_kernel(%arg0: i32, %arg1: memref<256x512xf32, #tpu.memory_space<vmem>>, %arg2: memref<2x512xf32, #tpu.memory_space<vmem>>, %arg3: memref<256x512xf32, #tpu.memory_space<vmem>>) attributes {dimension_semantics = [#tpu.dimension_semantics<parallel>], iteration_bounds = array<i64: 1>, scalar_prefetch = 0 : i64, scratch_operands = 0 : i64, tpu.core_type = #tpu.core_type<tc>, window_params = [{transform_indices = @transform_0, window_bounds = array<i64: 256, 512>}, {pipeline_mode = #tpu.pipeline_mode<synchronous>, transform_indices = @transform_1, window_bounds = array<i64: 2, 512>}, {transform_indices = @transform_2, window_bounds = array<i64: 256, 512>}]} {
    %c0 = arith.constant 0 : index
    %c0_0 = arith.constant 0 : index
    %0 = vector.load %arg2[%c0, %c0_0] : memref<2x512xf32, #tpu.memory_space<vmem>>, vector<1x512xf32>
    %c1 = arith.constant 1 : index
    %c0_1 = arith.constant 0 : index
    %1 = vector.load %arg2[%c1, %c0_1] : memref<2x512xf32, #tpu.memory_space<vmem>>, vector<1x512xf32>
    %c0_2 = arith.constant 0 : index
    %c0_3 = arith.constant 0 : index
    %2 = vector.load %arg1[%c0_2, %c0_3] : memref<256x512xf32, #tpu.memory_space<vmem>>, vector<256x512xf32>
    %3 = vector.broadcast %0 : vector<1x512xf32> to vector<256x512xf32>
    %4 = arith.mulf %2, %3 : vector<256x512xf32>
    %5 = vector.broadcast %1 : vector<1x512xf32> to vector<256x512xf32>
    %6 = arith.addf %4, %5 : vector<256x512xf32>
    %c0_4 = arith.constant 0 : index
    %c0_5 = arith.constant 0 : index
    %7 = vector.load %arg3[%c0_4, %c0_5] : memref<256x512xf32, #tpu.memory_space<vmem>>, vector<256x512xf32>
    tpu.vector_store %arg3[%c0_4, %c0_5], %6 {strides = array<i32>} : memref<256x512xf32, #tpu.memory_space<vmem>>, vector<256x512xf32>,
    return
  }
  func.func @transform_0(%arg0: i32) -> (i32, i32) {
    %c0_i32 = arith.constant 0 : i32
    %c0_i32_0 = arith.constant 0 : i32
    return %arg0, %c0_i32 : i32, i32
  }
  func.func @transform_1(%arg0: i32) -> (i32, i32) {
    %c0_i32 = arith.constant 0 : i32
    %c0_i32_0 = arith.constant 0 : i32
    %c0_i32_1 = arith.constant 0 : i32
    return %c0_i32, %c0_i32_0 : i32, i32
  }
  func.func @transform_2(%arg0: i32) -> (i32, i32) {
    %c0_i32 = arith.constant 0 : i32
    %c0_i32_0 = arith.constant 0 : i32
    return %arg0, %c0_i32 : i32, i32
  }
}

</mosaic_0001>

<bundles_post_ra>
// kernel: tpu_custom_call.1
= control target key start
LH: loop header
LB: loop body
LE: loop exit
PB: predicated region body
PF: predicated region fallthrough
CT: control target
= control target key end

     0   :  { %7 = vsyncpa [#allocation3], 0  ;;  %s985_s0 = inlined_call_operand.hbm [shape: f32[256,512], index: 0, kind: input, shape index: {}]   ;;  %s986_s1 = inlined_call_operand.hbm [shape: f32[2,512], index: 1, kind: input, shape index: {}]   ;;  %s987_s2 = inlined_call_operand.hbm [shape: f32[256,512], index: 2, kind: output, shape index: {}]  }
   0x1   :  { %8 = vsyncpa [#allocation6], 0 }
   0x2   :  { %9 = vsyncpa [#allocation4], 0  ;;  %s14_s11 = sshll.u32 %s985_s0, 4  ;;  %s678_s12 = smov [#allocation2]   ;;  %s15_s11 = int_to_ptr.hbm [resolvable:$true] %s14_s11 }
   0x3   :  { %s16_s13 = sshll.u32 %s678_s12, 4  ;;  %s28_s16 = sshll.u32 %s986_s1, 4  ;;  %s17_s13 = int_to_ptr.vmem [resolvable:$true] %s16_s13  ;;  %s29_s16 = int_to_ptr.hbm [resolvable:$true] %s28_s16 }
   0x4   :  { %s679_s17 = smov 512   ;;  %s680_s18 = smov 32  }
   0x5   :  { %22 = dma.hbm_to_vmem [thread:$0]  %s15_s11, 16384, %s17_s13, [#allocation3], %s679_s17, %s679_s17, %s680_s18  }
   0x6   :  { %s681_s19 = smov [#allocation5]  }
   0x7   :  { %s30_s20 = sshll.u32 %s681_s19, 4  ;;  %s31_s20 = int_to_ptr.vmem [resolvable:$true] %s30_s20 }
   0x8   :  { %33 = dma.hbm_to_vmem [thread:$0]  %s29_s16, 128, %s31_s20, [#allocation6]  }
   0x9   :  { %672 = dma.done.wait [#allocation3], 16384  }
   0xa   :  { %673 = vsyncadd [#allocation3], 4294950912 }
   0xb   :  { %674 = dma.done.wait [#allocation6], 128  }
   0xc   :  { %675 = vsyncadd [#allocation6], 4294967168  ;;  %v42_v0 = vld [vmem:[#allocation5] ss:$2 sm:$0xf]  ;;  %v46_v5 = vld [vmem:[#allocation2 + $0x8] sm:$0xff] }
   0xd   :  { %v44_v1 = vld [vmem:[#allocation5 + $0x1] ss:$2 sm:$0xf]  ;;  %v707_v3 = vperm.slane %v42_v0, 0  ;;  %v711_v6 = vperm.slane %v42_v0, 1  ;;  %v47_v8 = vld [vmem:[#allocation2 + $0x10] sm:$0xff] }
   0xe   :  { %v45_v2 = vld [vmem:[#allocation2] sm:$0xff]  ;;  %v709_v4 = vperm.slane %v44_v1, 0  ;;  %v713_v7 = vperm.slane %v44_v1, 1  ;;  %v715_v9 = vperm.slane %v42_v0, 2  ;;  %v717_v10 = vperm.slane %v44_v1, 2  ;;  %v48_v11 = vld [vmem:[#allocation2 + $0x18] sm:$0xff] }
   0xf   :  { %v719_v12 = vperm.slane %v42_v0, 3  ;;  %v721_v13 = vperm.slane %v44_v1, 3  ;;  %v182_v14 = vmul.f32 %v707_v3, %v45_v2  ;;  %v183_v15 = vmul.f32 %v711_v6, %v46_v5  ;;  %v49_v16 = vld [vmem:[#allocation2 + $0x20] sm:$0xff]  ;;  %v50_v17 = vld [vmem:[#allocation2 + $0x28] sm:$0xff]  ;;  %v51_v18 = vld [vmem:[#allocation2 + $0x30] sm:$0xff]  ;;  %s682_s0 = smov [#allocation7]  }
  0x10   :  { %v184_v19 = vmul.f32 %v715_v9, %v47_v8  ;;  %v186_v21 = vmul.f32 %v707_v3, %v49_v16  ;;  %v187_v22 = vmul.f32 %v711_v6, %v50_v17  ;;  %v52_v23 = vld [vmem:[#allocation2 + $0x38] sm:$0xff]  ;;  %v53_v24 = vld [vmem:[#allocation2 + $0x40] sm:$0xff]  ;;  %v188_v27 = vmul.f32 %v715_v9, %v51_v18  ;;  %v54_v28 = vld [vmem:[#allocation2 + $0x48] sm:$0xff]  ;;  %s579_s1 = sshll.u32 %s682_s0, 4  ;;  %s581_s23 = sshll.u32 %s987_s2, 4  ;;  %s580_s1 = int_to_ptr.vmem [resolvable:$true] %s579_s1  ;;  %s582_s23 = int_to_ptr.hbm [resolvable:$true] %s581_s23 }
  0x11   :  { %v185_v20 = vmul.f32 %v719_v12, %v48_v11  ;;  %v319_v25 = vadd.f32 %v709_v4, %v182_v14  ;;  %v320_v26 = vadd.f32 %v713_v7, %v183_v15  ;;  %v189_v31 = vmul.f32 %v719_v12, %v52_v23  ;;  %v55_v32 = vld [vmem:[#allocation2 + $0x50] sm:$0xff]  ;;  %v56_v35 = vld [vmem:[#allocation2 + $0x58] sm:$0xff]  ;;  %v57_v38 = vld [vmem:[#allocation2 + $0x60] sm:$0xff] }
  0x12   :  { %v321_v29 = vadd.f32 %v717_v10, %v184_v19  ;;  %v323_v33 = vadd.f32 %v709_v4, %v186_v21  ;;  %v190_v34 = vmul.f32 %v707_v3, %v53_v24  ;;  %v324_v36 = vadd.f32 %v713_v7, %v187_v22  ;;  %v58_v41 = vld [vmem:[#allocation2 + $0x68] sm:$0xff]  ;;  %v59_v44 = vld [vmem:[#allocation2 + $0x70] sm:$0xff]  ;;  %v60_v47 = vld [vmem:[#allocation2 + $0x78] sm:$0xff] }
  0x13   :  { %v322_v30 = vadd.f32 %v721_v13, %v185_v20  ;;  %447 = vst [vmem:[#allocation7] sm:$0xff] %v319_v25  ;;  %v191_v37 = vmul.f32 %v711_v6, %v54_v28  ;;  %v325_v39 = vadd.f32 %v717_v10, %v188_v27  ;;  %v192_v40 = vmul.f32 %v715_v9, %v55_v32  ;;  %v61_v50 = vld [vmem:[#allocation2 + $0x80] sm:$0xff]  ;;  %v62_v53 = vld [vmem:[#allocation2 + $0x88] sm:$0xff]  ;;  %v63_v56 = vld [vmem:[#allocation2 + $0x90] sm:$0xff] }
  0x14   :  { %448 = vst [vmem:[#allocation7 + $0x8] sm:$0xff] %v320_v26  ;;  %v326_v42 = vadd.f32 %v721_v13, %v189_v31  ;;  %v193_v43 = vmul.f32 %v719_v12, %v56_v35  ;;  %v327_v45 = vadd.f32 %v709_v4, %v190_v34  ;;  %v194_v46 = vmul.f32 %v707_v3, %v57_v38  ;;  %v64_v59 = vld [vmem:[#allocation2 + $0x98] sm:$0xff]  ;;  %v65_v62 = vld [vmem:[#allocation2 + $0xa0] sm:$0xff]  ;;  %v66_v1 = vld [vmem:[#allocation2 + $0xa8] sm:$0xff] }
  0x15   :  { %449 = vst [vmem:[#allocation7 + $0x10] sm:$0xff] %v321_v29  ;;  %v328_v48 = vadd.f32 %v713_v7, %v191_v37  ;;  %v195_v49 = vmul.f32 %v711_v6, %v58_v41  ;;  %v329_v51 = vadd.f32 %v717_v10, %v192_v40  ;;  %v196_v52 = vmul.f32 %v715_v9, %v59_v44  ;;  %v67_v8 = vld [vmem:[#allocation2 + $0xb0] sm:$0xff]  ;;  %v68_v15 = vld [vmem:[#allocation2 + $0xb8] sm:$0xff]  ;;  %v69_v18 = vld [vmem:[#allocation2 + $0xc0] sm:$0xff] }
  0x16   :  { %450 = vst [vmem:[#allocation7 + $0x18] sm:$0xff] %v322_v30  ;;  %v330_v54 = vadd.f32 %v721_v13, %v193_v43  ;;  %v197_v55 = vmul.f32 %v719_v12, %v60_v47  ;;  %v331_v57 = vadd.f32 %v709_v4, %v194_v46  ;;  %v198_v58 = vmul.f32 %v707_v3, %v61_v50  ;;  %v70_v21 = vld [vmem:[#allocation2 + $0xc8] sm:$0xff]  ;;  %v71_v24 = vld [vmem:[#allocation2 + $0xd0] sm:$0xff]  ;;  %v72_v27 = vld [vmem:[#allocation2 + $0xd8] sm:$0xff] }
  0x17   :  { %451 = vst [vmem:[#allocation7 + $0x20] sm:$0xff] %v323_v33  ;;  %v332_v60 = vadd.f32 %v713_v7, %v195_v49  ;;  %v199_v61 = vmul.f32 %v711_v6, %v62_v53  ;;  %v333_v63 = vadd.f32 %v717_v10, %v196_v52  ;;  %v200_v0 = vmul.f32 %v715_v9, %v63_v56  ;;  %v73_v30 = vld [vmem:[#allocation2 + $0xe0] sm:$0xff]  ;;  %v74_v33 = vld [vmem:[#allocation2 + $0xe8] sm:$0xff] }
  0x18   :  { %452 = vst [vmem:[#allocation7 + $0x28] sm:$0xff] %v324_v36  ;;  %v334_v2 = vadd.f32 %v721_v13, %v197_v55  ;;  %v201_v5 = vmul.f32 %v719_v12, %v64_v59  ;;  %v335_v11 = vadd.f32 %v709_v4, %v198_v58  ;;  %v202_v14 = vmul.f32 %v707_v3, %v65_v62  ;;  %v75_v36 = vld [vmem:[#allocation2 + $0xf0] sm:$0xff] }
  0x19   :  { %453 = vst [vmem:[#allocation7 + $0x30] sm:$0xff] %v325_v39  ;;  %v336_v16 = vadd.f32 %v713_v7, %v199_v61  ;;  %v203_v17 = vmul.f32 %v711_v6, %v66_v1  ;;  %v337_v19 = vadd.f32 %v717_v10, %v200_v0  ;;  %v204_v20 = vmul.f32 %v715_v9, %v67_v8  ;;  %v76_v39 = vld [vmem:[#allocation2 + $0xf8] sm:$0xff] }
  0x1a   :  { %454 = vst [vmem:[#allocation7 + $0x38] sm:$0xff] %v326_v42  ;;  %v338_v22 = vadd.f32 %v721_v13, %v201_v5  ;;  %v205_v23 = vmul.f32 %v719_v12, %v68_v15  ;;  %v339_v25 = vadd.f32 %v709_v4, %v202_v14  ;;  %v206_v26 = vmul.f32 %v707_v3, %v69_v18  ;;  %v77_v42 = vld [vmem:[#allocation2 + $0x100] sm:$0xff] }
  0x1b   :  { %455 = vst [vmem:[#allocation7 + $0x40] sm:$0xff] %v327_v45  ;;  %v340_v28 = vadd.f32 %v713_v7, %v203_v17  ;;  %v207_v29 = vmul.f32 %v711_v6, %v70_v21  ;;  %v341_v31 = vadd.f32 %v717_v10, %v204_v20  ;;  %v208_v32 = vmul.f32 %v715_v9, %v71_v24  ;;  %v78_v45 = vld [vmem:[#allocation2 + $0x108] sm:$0xff] }
  0x1c   :  { %456 = vst [vmem:[#allocation7 + $0x48] sm:$0xff] %v328_v48  ;;  %v342_v34 = vadd.f32 %v721_v13, %v205_v23  ;;  %v209_v35 = vmul.f32 %v719_v12, %v72_v27  ;;  %v343_v37 = vadd.f32 %v709_v4, %v206_v26  ;;  %v210_v38 = vmul.f32 %v707_v3, %v73_v30  ;;  %v79_v48 = vld [vmem:[#allocation2 + $0x110] sm:$0xff] }
  0x1d   :  { %457 = vst [vmem:[#allocation7 + $0x50] sm:$0xff] %v329_v51  ;;  %v344_v40 = vadd.f32 %v713_v7, %v207_v29  ;;  %v211_v41 = vmul.f32 %v711_v6, %v74_v33  ;;  %v345_v43 = vadd.f32 %v717_v10, %v208_v32  ;;  %v212_v44 = vmul.f32 %v715_v9, %v75_v36  ;;  %v80_v51 = vld [vmem:[#allocation2 + $0x118] sm:$0xff] }
  0x1e   :  { %458 = vst [vmem:[#allocation7 + $0x58] sm:$0xff] %v330_v54  ;;  %v346_v46 = vadd.f32 %v721_v13, %v209_v35  ;;  %v213_v47 = vmul.f32 %v719_v12, %v76_v39  ;;  %v347_v49 = vadd.f32 %v709_v4, %v210_v38  ;;  %v214_v50 = vmul.f32 %v707_v3, %v77_v42  ;;  %v81_v54 = vld [vmem:[#allocation2 + $0x120] sm:$0xff] }
  0x1f   :  { %459 = vst [vmem:[#allocation7 + $0x60] sm:$0xff] %v331_v57  ;;  %v348_v52 = vadd.f32 %v713_v7, %v211_v41  ;;  %v215_v53 = vmul.f32 %v711_v6, %v78_v45  ;;  %v349_v55 = vadd.f32 %v717_v10, %v212_v44  ;;  %v216_v56 = vmul.f32 %v715_v9, %v79_v48  ;;  %v82_v57 = vld [vmem:[#allocation2 + $0x128] sm:$0xff] }
  0x20   :  { %460 = vst [vmem:[#allocation7 + $0x68] sm:$0xff] %v332_v60  ;;  %v350_v58 = vadd.f32 %v721_v13, %v213_v47  ;;  %v217_v59 = vmul.f32 %v719_v12, %v80_v51  ;;  %v83_v60 = vld [vmem:[#allocation2 + $0x130] sm:$0xff]  ;;  %v351_v61 = vadd.f32 %v709_v4, %v214_v50  ;;  %v218_v62 = vmul.f32 %v707_v3, %v81_v54 }
  0x21   :  { %461 = vst [vmem:[#allocation7 + $0x70] sm:$0xff] %v333_v63  ;;  %v84_v63 = vld [vmem:[#allocation2 + $0x138] sm:$0xff]  ;;  %v352_v0 = vadd.f32 %v713_v7, %v215_v53  ;;  %v219_v1 = vmul.f32 %v711_v6, %v82_v57  ;;  %v353_v5 = vadd.f32 %v717_v10, %v216_v56  ;;  %v220_v8 = vmul.f32 %v715_v9, %v83_v60 }
  0x22   :  { %462 = vst [vmem:[#allocation7 + $0x78] sm:$0xff] %v334_v2  ;;  %v85_v2 = vld [vmem:[#allocation2 + $0x140] sm:$0xff]  ;;  %v354_v14 = vadd.f32 %v721_v13, %v217_v59  ;;  %v221_v15 = vmul.f32 %v719_v12, %v84_v63  ;;  %v355_v17 = vadd.f32 %v709_v4, %v218_v62 }
  0x23   :  { %463 = vst [vmem:[#allocation7 + $0x80] sm:$0xff] %v335_v11  ;;  %v86_v11 = vld [vmem:[#allocation2 + $0x148] sm:$0xff]  ;;  %v222_v18 = vmul.f32 %v707_v3, %v85_v2  ;;  %v356_v20 = vadd.f32 %v713_v7, %v219_v1  ;;  %v357_v23 = vadd.f32 %v717_v10, %v220_v8 }
  0x24   :  { %464 = vst [vmem:[#allocation7 + $0x88] sm:$0xff] %v336_v16  ;;  %v87_v16 = vld [vmem:[#allocation2 + $0x150] sm:$0xff]  ;;  %v223_v21 = vmul.f32 %v711_v6, %v86_v11  ;;  %v358_v26 = vadd.f32 %v721_v13, %v221_v15 }
  0x25   :  { %465 = vst [vmem:[#allocation7 + $0x90] sm:$0xff] %v337_v19  ;;  %v88_v19 = vld [vmem:[#allocation2 + $0x158] sm:$0xff]  ;;  %v224_v24 = vmul.f32 %v715_v9, %v87_v16  ;;  %v359_v29 = vadd.f32 %v709_v4, %v222_v18 }
  0x26   :  { %466 = vst [vmem:[#allocation7 + $0x98] sm:$0xff] %v338_v22  ;;  %v89_v22 = vld [vmem:[#allocation2 + $0x160] sm:$0xff]  ;;  %v225_v27 = vmul.f32 %v719_v12, %v88_v19  ;;  %v360_v32 = vadd.f32 %v713_v7, %v223_v21 }
  0x27   :  { %467 = vst [vmem:[#allocation7 + $0xa0] sm:$0xff] %v339_v25  ;;  %v90_v25 = vld [vmem:[#allocation2 + $0x168] sm:$0xff]  ;;  %v226_v30 = vmul.f32 %v707_v3, %v89_v22  ;;  %v361_v35 = vadd.f32 %v717_v10, %v224_v24 }
  0x28   :  { %468 = vst [vmem:[#allocation7 + $0xa8] sm:$0xff] %v340_v28  ;;  %v91_v28 = vld [vmem:[#allocation2 + $0x170] sm:$0xff]  ;;  %v227_v33 = vmul.f32 %v711_v6, %v90_v25  ;;  %v362_v38 = vadd.f32 %v721_v13, %v225_v27 }
  0x29   :  { %469 = vst [vmem:[#allocation7 + $0xb0] sm:$0xff] %v341_v31  ;;  %v92_v31 = vld [vmem:[#allocation2 + $0x178] sm:$0xff]  ;;  %v228_v36 = vmul.f32 %v715_v9, %v91_v28  ;;  %v363_v41 = vadd.f32 %v709_v4, %v226_v30 }
  0x2a   :  { %470 = vst [vmem:[#allocation7 + $0xb8] sm:$0xff] %v342_v34  ;;  %v93_v34 = vld [vmem:[#allocation2 + $0x180] sm:$0xff]  ;;  %v229_v39 = vmul.f32 %v719_v12, %v92_v31  ;;  %v364_v44 = vadd.f32 %v713_v7, %v227_v33 }
  0x2b   :  { %471 = vst [vmem:[#allocation7 + $0xc0] sm:$0xff] %v343_v37  ;;  %v94_v37 = vld [vmem:[#allocation2 + $0x188] sm:$0xff]  ;;  %v230_v42 = vmul.f32 %v707_v3, %v93_v34  ;;  %v365_v47 = vadd.f32 %v717_v10, %v228_v36 }
  0x2c   :  { %472 = vst [vmem:[#allocation7 + $0xc8] sm:$0xff] %v344_v40  ;;  %v95_v40 = vld [vmem:[#allocation2 + $0x190] sm:$0xff]  ;;  %v231_v45 = vmul.f32 %v711_v6, %v94_v37  ;;  %v366_v50 = vadd.f32 %v721_v13, %v229_v39 }
  0x2d   :  { %473 = vst [vmem:[#allocation7 + $0xd0] sm:$0xff] %v345_v43  ;;  %v96_v43 = vld [vmem:[#allocation2 + $0x198] sm:$0xff]  ;;  %v232_v48 = vmul.f32 %v715_v9, %v95_v40  ;;  %v367_v53 = vadd.f32 %v709_v4, %v230_v42 }
  0x2e   :  { %474 = vst [vmem:[#allocation7 + $0xd8] sm:$0xff] %v346_v46  ;;  %v97_v46 = vld [vmem:[#allocation2 + $0x1a0] sm:$0xff]  ;;  %v233_v51 = vmul.f32 %v719_v12, %v96_v43  ;;  %v368_v56 = vadd.f32 %v713_v7, %v231_v45 }
  0x2f   :  { %475 = vst [vmem:[#allocation7 + $0xe0] sm:$0xff] %v347_v49  ;;  %v98_v49 = vld [vmem:[#allocation2 + $0x1a8] sm:$0xff]  ;;  %v234_v54 = vmul.f32 %v707_v3, %v97_v46  ;;  %v369_v59 = vadd.f32 %v717_v10, %v232_v48 }
  0x30   :  { %476 = vst [vmem:[#allocation7 + $0xe8] sm:$0xff] %v348_v52  ;;  %v99_v52 = vld [vmem:[#allocation2 + $0x1b0] sm:$0xff]  ;;  %v235_v57 = vmul.f32 %v711_v6, %v98_v49  ;;  %v370_v62 = vadd.f32 %v721_v13, %v233_v51 }
  0x31   :  { %477 = vst [vmem:[#allocation7 + $0xf0] sm:$0xff] %v349_v55  ;;  %v100_v55 = vld [vmem:[#allocation2 + $0x1b8] sm:$0xff]  ;;  %v236_v60 = vmul.f32 %v715_v9, %v99_v52  ;;  %v371_v1 = vadd.f32 %v709_v4, %v234_v54 }
  0x32   :  { %478 = vst [vmem:[#allocation7 + $0xf8] sm:$0xff] %v350_v58  ;;  %v101_v58 = vld [vmem:[#allocation2 + $0x1c0] sm:$0xff]  ;;  %v237_v63 = vmul.f32 %v719_v12, %v100_v55  ;;  %v372_v8 = vadd.f32 %v713_v7, %v235_v57 }
  0x33   :  { %479 = vst [vmem:[#allocation7 + $0x100] sm:$0xff] %v351_v61  ;;  %v102_v61 = vld [vmem:[#allocation2 + $0x1c8] sm:$0xff]  ;;  %v238_v2 = vmul.f32 %v707_v3, %v101_v58  ;;  %v373_v15 = vadd.f32 %v717_v10, %v236_v60 }
  0x34   :  { %480 = vst [vmem:[#allocation7 + $0x108] sm:$0xff] %v352_v0  ;;  %v103_v0 = vld [vmem:[#allocation2 + $0x1d0] sm:$0xff]  ;;  %v239_v11 = vmul.f32 %v711_v6, %v102_v61  ;;  %v374_v18 = vadd.f32 %v721_v13, %v237_v63 }
  0x35   :  { %481 = vst [vmem:[#allocation7 + $0x110] sm:$0xff] %v353_v5  ;;  %v104_v5 = vld [vmem:[#allocation2 + $0x1d8] sm:$0xff]  ;;  %v240_v16 = vmul.f32 %v715_v9, %v103_v0  ;;  %v375_v21 = vadd.f32 %v709_v4, %v238_v2 }
  0x36   :  { %482 = vst [vmem:[#allocation7 + $0x118] sm:$0xff] %v354_v14  ;;  %v105_v14 = vld [vmem:[#allocation2 + $0x1e0] sm:$0xff]  ;;  %v241_v19 = vmul.f32 %v719_v12, %v104_v5  ;;  %v376_v24 = vadd.f32 %v713_v7, %v239_v11 }
  0x37   :  { %483 = vst [vmem:[#allocation7 + $0x120] sm:$0xff] %v355_v17  ;;  %v106_v17 = vld [vmem:[#allocation2 + $0x1e8] sm:$0xff]  ;;  %v242_v22 = vmul.f32 %v707_v3, %v105_v14  ;;  %v377_v27 = vadd.f32 %v717_v10, %v240_v16 }
  0x38   :  { %484 = vst [vmem:[#allocation7 + $0x128] sm:$0xff] %v356_v20  ;;  %v107_v20 = vld [vmem:[#allocation2 + $0x1f0] sm:$0xff]  ;;  %v243_v25 = vmul.f32 %v711_v6, %v106_v17  ;;  %v378_v30 = vadd.f32 %v721_v13, %v241_v19 }
  0x39   :  { %485 = vst [vmem:[#allocation7 + $0x130] sm:$0xff] %v357_v23  ;;  %v108_v23 = vld [vmem:[#allocation2 + $0x1f8] sm:$0xff]  ;;  %v244_v28 = vmul.f32 %v715_v9, %v107_v20  ;;  %v379_v33 = vadd.f32 %v709_v4, %v242_v22 }
  0x3a   :  { %486 = vst [vmem:[#allocation7 + $0x138] sm:$0xff] %v358_v26  ;;  %v109_v26 = vld [vmem:[#allocation2 + $0x200] sm:$0xff]  ;;  %v245_v31 = vmul.f32 %v719_v12, %v108_v23  ;;  %v380_v36 = vadd.f32 %v713_v7, %v243_v25 }
  0x3b   :  { %487 = vst [vmem:[#allocation7 + $0x140] sm:$0xff] %v359_v29  ;;  %v110_v29 = vld [vmem:[#allocation2 + $0x208] sm:$0xff]  ;;  %v246_v34 = vmul.f32 %v707_v3, %v109_v26  ;;  %v381_v39 = vadd.f32 %v717_v10, %v244_v28 }
  0x3c   :  { %488 = vst [vmem:[#allocation7 + $0x148] sm:$0xff] %v360_v32  ;;  %v111_v32 = vld [vmem:[#allocation2 + $0x210] sm:$0xff]  ;;  %v247_v37 = vmul.f32 %v711_v6, %v110_v29  ;;  %v382_v42 = vadd.f32 %v721_v13, %v245_v31 }
  0x3d   :  { %489 = vst [vmem:[#allocation7 + $0x150] sm:$0xff] %v361_v35  ;;  %v112_v35 = vld [vmem:[#allocation2 + $0x218] sm:$0xff]  ;;  %v248_v40 = vmul.f32 %v715_v9, %v111_v32  ;;  %v383_v45 = vadd.f32 %v709_v4, %v246_v34 }
  0x3e   :  { %490 = vst [vmem:[#allocation7 + $0x158] sm:$0xff] %v362_v38  ;;  %v113_v38 = vld [vmem:[#allocation2 + $0x220] sm:$0xff]  ;;  %v249_v43 = vmul.f32 %v719_v12, %v112_v35  ;;  %v384_v48 = vadd.f32 %v713_v7, %v247_v37 }
  0x3f   :  { %491 = vst [vmem:[#allocation7 + $0x160] sm:$0xff] %v363_v41  ;;  %v114_v41 = vld [vmem:[#allocation2 + $0x228] sm:$0xff]  ;;  %v250_v46 = vmul.f32 %v707_v3, %v113_v38  ;;  %v385_v51 = vadd.f32 %v717_v10, %v248_v40 }
  0x40   :  { %492 = vst [vmem:[#allocation7 + $0x168] sm:$0xff] %v364_v44  ;;  %v115_v44 = vld [vmem:[#allocation2 + $0x230] sm:$0xff]  ;;  %v251_v49 = vmul.f32 %v711_v6, %v114_v41  ;;  %v386_v54 = vadd.f32 %v721_v13, %v249_v43 }
  0x41   :  { %493 = vst [vmem:[#allocation7 + $0x170] sm:$0xff] %v365_v47  ;;  %v116_v47 = vld [vmem:[#allocation2 + $0x238] sm:$0xff]  ;;  %v252_v52 = vmul.f32 %v715_v9, %v115_v44  ;;  %v387_v57 = vadd.f32 %v709_v4, %v250_v46 }
  0x42   :  { %494 = vst [vmem:[#allocation7 + $0x178] sm:$0xff] %v366_v50  ;;  %v117_v50 = vld [vmem:[#allocation2 + $0x240] sm:$0xff]  ;;  %v253_v55 = vmul.f32 %v719_v12, %v116_v47  ;;  %v388_v60 = vadd.f32 %v713_v7, %v251_v49 }
  0x43   :  { %495 = vst [vmem:[#allocation7 + $0x180] sm:$0xff] %v367_v53  ;;  %v118_v53 = vld [vmem:[#allocation2 + $0x248] sm:$0xff]  ;;  %v254_v58 = vmul.f32 %v707_v3, %v117_v50  ;;  %v389_v63 = vadd.f32 %v717_v10, %v252_v52 }
  0x44   :  { %496 = vst [vmem:[#allocation7 + $0x188] sm:$0xff] %v368_v56  ;;  %v119_v56 = vld [vmem:[#allocation2 + $0x250] sm:$0xff]  ;;  %v255_v61 = vmul.f32 %v711_v6, %v118_v53  ;;  %v390_v2 = vadd.f32 %v721_v13, %v253_v55 }
  0x45   :  { %497 = vst [vmem:[#allocation7 + $0x190] sm:$0xff] %v369_v59  ;;  %v120_v59 = vld [vmem:[#allocation2 + $0x258] sm:$0xff]  ;;  %v256_v0 = vmul.f32 %v715_v9, %v119_v56  ;;  %v391_v11 = vadd.f32 %v709_v4, %v254_v58 }
  0x46   :  { %498 = vst [vmem:[#allocation7 + $0x198] sm:$0xff] %v370_v62  ;;  %v121_v62 = vld [vmem:[#allocation2 + $0x260] sm:$0xff]  ;;  %v257_v5 = vmul.f32 %v719_v12, %v120_v59  ;;  %v392_v16 = vadd.f32 %v713_v7, %v255_v61 }
  0x47   :  { %499 = vst [vmem:[#allocation7 + $0x1a0] sm:$0xff] %v371_v1  ;;  %v122_v1 = vld [vmem:[#allocation2 + $0x268] sm:$0xff]  ;;  %v258_v14 = vmul.f32 %v707_v3, %v121_v62  ;;  %v393_v19 = vadd.f32 %v717_v10, %v256_v0 }
  0x48   :  { %500 = vst [vmem:[#allocation7 + $0x1a8] sm:$0xff] %v372_v8  ;;  %v123_v8 = vld [vmem:[#allocation2 + $0x270] sm:$0xff]  ;;  %v259_v17 = vmul.f32 %v711_v6, %v122_v1  ;;  %v394_v22 = vadd.f32 %v721_v13, %v257_v5 }
  0x49   :  { %501 = vst [vmem:[#allocation7 + $0x1b0] sm:$0xff] %v373_v15  ;;  %v124_v15 = vld [vmem:[#allocation2 + $0x278] sm:$0xff]  ;;  %v260_v20 = vmul.f32 %v715_v9, %v123_v8  ;;  %v395_v25 = vadd.f32 %v709_v4, %v258_v14 }
  0x4a   :  { %502 = vst [vmem:[#allocation7 + $0x1b8] sm:$0xff] %v374_v18  ;;  %v125_v18 = vld [vmem:[#allocation2 + $0x280] sm:$0xff]  ;;  %v261_v23 = vmul.f32 %v719_v12, %v124_v15  ;;  %v396_v28 = vadd.f32 %v713_v7, %v259_v17 }
  0x4b   :  { %503 = vst [vmem:[#allocation7 + $0x1c0] sm:$0xff] %v375_v21  ;;  %v126_v21 = vld [vmem:[#allocation2 + $0x288] sm:$0xff]  ;;  %v262_v26 = vmul.f32 %v707_v3, %v125_v18  ;;  %v397_v31 = vadd.f32 %v717_v10, %v260_v20 }
  0x4c   :  { %504 = vst [vmem:[#allocation7 + $0x1c8] sm:$0xff] %v376_v24  ;;  %v127_v24 = vld [vmem:[#allocation2 + $0x290] sm:$0xff]  ;;  %v263_v29 = vmul.f32 %v711_v6, %v126_v21  ;;  %v398_v34 = vadd.f32 %v721_v13, %v261_v23 }
  0x4d   :  { %505 = vst [vmem:[#allocation7 + $0x1d0] sm:$0xff] %v377_v27  ;;  %v128_v27 = vld [vmem:[#allocation2 + $0x298] sm:$0xff]  ;;  %v264_v32 = vmul.f32 %v715_v9, %v127_v24  ;;  %v399_v37 = vadd.f32 %v709_v4, %v262_v26 }
  0x4e   :  { %506 = vst [vmem:[#allocation7 + $0x1d8] sm:$0xff] %v378_v30  ;;  %v129_v30 = vld [vmem:[#allocation2 + $0x2a0] sm:$0xff]  ;;  %v265_v35 = vmul.f32 %v719_v12, %v128_v27  ;;  %v400_v40 = vadd.f32 %v713_v7, %v263_v29 }
  0x4f   :  { %507 = vst [vmem:[#allocation7 + $0x1e0] sm:$0xff] %v379_v33  ;;  %v130_v33 = vld [vmem:[#allocation2 + $0x2a8] sm:$0xff]  ;;  %v266_v38 = vmul.f32 %v707_v3, %v129_v30  ;;  %v401_v43 = vadd.f32 %v717_v10, %v264_v32 }
  0x50   :  { %508 = vst [vmem:[#allocation7 + $0x1e8] sm:$0xff] %v380_v36  ;;  %v131_v36 = vld [vmem:[#allocation2 + $0x2b0] sm:$0xff]  ;;  %v267_v41 = vmul.f32 %v711_v6, %v130_v33  ;;  %v402_v46 = vadd.f32 %v721_v13, %v265_v35 }
  0x51   :  { %509 = vst [vmem:[#allocation7 + $0x1f0] sm:$0xff] %v381_v39  ;;  %v132_v39 = vld [vmem:[#allocation2 + $0x2b8] sm:$0xff]  ;;  %v268_v44 = vmul.f32 %v715_v9, %v131_v36  ;;  %v403_v49 = vadd.f32 %v709_v4, %v266_v38 }
  0x52   :  { %510 = vst [vmem:[#allocation7 + $0x1f8] sm:$0xff] %v382_v42  ;;  %v133_v42 = vld [vmem:[#allocation2 + $0x2c0] sm:$0xff]  ;;  %v269_v47 = vmul.f32 %v719_v12, %v132_v39  ;;  %v404_v52 = vadd.f32 %v713_v7, %v267_v41 }
  0x53   :  { %511 = vst [vmem:[#allocation7 + $0x200] sm:$0xff] %v383_v45  ;;  %v134_v45 = vld [vmem:[#allocation2 + $0x2c8] sm:$0xff]  ;;  %v270_v50 = vmul.f32 %v707_v3, %v133_v42  ;;  %v405_v55 = vadd.f32 %v717_v10, %v268_v44 }
  0x54   :  { %512 = vst [vmem:[#allocation7 + $0x208] sm:$0xff] %v384_v48  ;;  %v135_v48 = vld [vmem:[#allocation2 + $0x2d0] sm:$0xff]  ;;  %v271_v53 = vmul.f32 %v711_v6, %v134_v45  ;;  %v406_v58 = vadd.f32 %v721_v13, %v269_v47 }
  0x55   :  { %513 = vst [vmem:[#allocation7 + $0x210] sm:$0xff] %v385_v51  ;;  %v136_v51 = vld [vmem:[#allocation2 + $0x2d8] sm:$0xff]  ;;  %v272_v56 = vmul.f32 %v715_v9, %v135_v48  ;;  %v407_v61 = vadd.f32 %v709_v4, %v270_v50 }
  0x56   :  { %514 = vst [vmem:[#allocation7 + $0x218] sm:$0xff] %v386_v54  ;;  %v137_v54 = vld [vmem:[#allocation2 + $0x2e0] sm:$0xff]  ;;  %v273_v59 = vmul.f32 %v719_v12, %v136_v51  ;;  %v408_v0 = vadd.f32 %v713_v7, %v271_v53 }
  0x57   :  { %515 = vst [vmem:[#allocation7 + $0x220] sm:$0xff] %v387_v57  ;;  %v138_v57 = vld [vmem:[#allocation2 + $0x2e8] sm:$0xff]  ;;  %v274_v62 = vmul.f32 %v707_v3, %v137_v54  ;;  %v409_v5 = vadd.f32 %v717_v10, %v272_v56 }
  0x58   :  { %516 = vst [vmem:[#allocation7 + $0x228] sm:$0xff] %v388_v60  ;;  %v139_v60 = vld [vmem:[#allocation2 + $0x2f0] sm:$0xff]  ;;  %v275_v1 = vmul.f32 %v711_v6, %v138_v57  ;;  %v410_v14 = vadd.f32 %v721_v13, %v273_v59 }
  0x59   :  { %517 = vst [vmem:[#allocation7 + $0x230] sm:$0xff] %v389_v63  ;;  %v140_v63 = vld [vmem:[#allocation2 + $0x2f8] sm:$0xff]  ;;  %v276_v8 = vmul.f32 %v715_v9, %v139_v60  ;;  %v411_v17 = vadd.f32 %v709_v4, %v274_v62 }
  0x5a   :  { %518 = vst [vmem:[#allocation7 + $0x238] sm:$0xff] %v390_v2  ;;  %v141_v2 = vld [vmem:[#allocation2 + $0x300] sm:$0xff]  ;;  %v277_v15 = vmul.f32 %v719_v12, %v140_v63  ;;  %v412_v20 = vadd.f32 %v713_v7, %v275_v1 }
  0x5b   :  { %519 = vst [vmem:[#allocation7 + $0x240] sm:$0xff] %v391_v11  ;;  %v142_v11 = vld [vmem:[#allocation2 + $0x308] sm:$0xff]  ;;  %v278_v18 = vmul.f32 %v707_v3, %v141_v2  ;;  %v413_v23 = vadd.f32 %v717_v10, %v276_v8 }
  0x5c   :  { %520 = vst [vmem:[#allocation7 + $0x248] sm:$0xff] %v392_v16  ;;  %v143_v16 = vld [vmem:[#allocation2 + $0x310] sm:$0xff]  ;;  %v279_v21 = vmul.f32 %v711_v6, %v142_v11  ;;  %v414_v26 = vadd.f32 %v721_v13, %v277_v15 }
  0x5d   :  { %521 = vst [vmem:[#allocation7 + $0x250] sm:$0xff] %v393_v19  ;;  %v144_v19 = vld [vmem:[#allocation2 + $0x318] sm:$0xff]  ;;  %v280_v24 = vmul.f32 %v715_v9, %v143_v16  ;;  %v415_v29 = vadd.f32 %v709_v4, %v278_v18 }
  0x5e   :  { %522 = vst [vmem:[#allocation7 + $0x258] sm:$0xff] %v394_v22  ;;  %v145_v22 = vld [vmem:[#allocation2 + $0x320] sm:$0xff]  ;;  %v281_v27 = vmul.f32 %v719_v12, %v144_v19  ;;  %v416_v32 = vadd.f32 %v713_v7, %v279_v21 }
  0x5f   :  { %523 = vst [vmem:[#allocation7 + $0x260] sm:$0xff] %v395_v25  ;;  %v146_v25 = vld [vmem:[#allocation2 + $0x328] sm:$0xff]  ;;  %v282_v30 = vmul.f32 %v707_v3, %v145_v22  ;;  %v417_v35 = vadd.f32 %v717_v10, %v280_v24 }
  0x60   :  { %524 = vst [vmem:[#allocation7 + $0x268] sm:$0xff] %v396_v28  ;;  %v147_v28 = vld [vmem:[#allocation2 + $0x330] sm:$0xff]  ;;  %v283_v33 = vmul.f32 %v711_v6, %v146_v25  ;;  %v418_v38 = vadd.f32 %v721_v13, %v281_v27 }
  0x61   :  { %525 = vst [vmem:[#allocation7 + $0x270] sm:$0xff] %v397_v31  ;;  %v148_v31 = vld [vmem:[#allocation2 + $0x338] sm:$0xff]  ;;  %v284_v36 = vmul.f32 %v715_v9, %v147_v28  ;;  %v419_v41 = vadd.f32 %v709_v4, %v282_v30 }
  0x62   :  { %526 = vst [vmem:[#allocation7 + $0x278] sm:$0xff] %v398_v34  ;;  %v149_v34 = vld [vmem:[#allocation2 + $0x340] sm:$0xff]  ;;  %v285_v39 = vmul.f32 %v719_v12, %v148_v31  ;;  %v420_v44 = vadd.f32 %v713_v7, %v283_v33 }
  0x63   :  { %527 = vst [vmem:[#allocation7 + $0x280] sm:$0xff] %v399_v37  ;;  %v150_v37 = vld [vmem:[#allocation2 + $0x348] sm:$0xff]  ;;  %v286_v42 = vmul.f32 %v707_v3, %v149_v34  ;;  %v421_v47 = vadd.f32 %v717_v10, %v284_v36 }
  0x64   :  { %528 = vst [vmem:[#allocation7 + $0x288] sm:$0xff] %v400_v40  ;;  %v151_v40 = vld [vmem:[#allocation2 + $0x350] sm:$0xff]  ;;  %v287_v45 = vmul.f32 %v711_v6, %v150_v37  ;;  %v422_v50 = vadd.f32 %v721_v13, %v285_v39 }
  0x65   :  { %529 = vst [vmem:[#allocation7 + $0x290] sm:$0xff] %v401_v43  ;;  %v152_v43 = vld [vmem:[#allocation2 + $0x358] sm:$0xff]  ;;  %v288_v48 = vmul.f32 %v715_v9, %v151_v40  ;;  %v423_v53 = vadd.f32 %v709_v4, %v286_v42 }
  0x66   :  { %530 = vst [vmem:[#allocation7 + $0x298] sm:$0xff] %v402_v46  ;;  %v153_v46 = vld [vmem:[#allocation2 + $0x360] sm:$0xff]  ;;  %v289_v51 = vmul.f32 %v719_v12, %v152_v43  ;;  %v424_v56 = vadd.f32 %v713_v7, %v287_v45 }
  0x67   :  { %531 = vst [vmem:[#allocation7 + $0x2a0] sm:$0xff] %v403_v49  ;;  %v154_v49 = vld [vmem:[#allocation2 + $0x368] sm:$0xff]  ;;  %v290_v54 = vmul.f32 %v707_v3, %v153_v46  ;;  %v425_v59 = vadd.f32 %v717_v10, %v288_v48 }
  0x68   :  { %532 = vst [vmem:[#allocation7 + $0x2a8] sm:$0xff] %v404_v52  ;;  %v155_v52 = vld [vmem:[#allocation2 + $0x370] sm:$0xff]  ;;  %v291_v57 = vmul.f32 %v711_v6, %v154_v49  ;;  %v426_v62 = vadd.f32 %v721_v13, %v289_v51 }
  0x69   :  { %533 = vst [vmem:[#allocation7 + $0x2b0] sm:$0xff] %v405_v55  ;;  %v156_v55 = vld [vmem:[#allocation2 + $0x378] sm:$0xff]  ;;  %v292_v60 = vmul.f32 %v715_v9, %v155_v52  ;;  %v427_v1 = vadd.f32 %v709_v4, %v290_v54 }
  0x6a   :  { %534 = vst [vmem:[#allocation7 + $0x2b8] sm:$0xff] %v406_v58  ;;  %v157_v58 = vld [vmem:[#allocation2 + $0x380] sm:$0xff]  ;;  %v293_v63 = vmul.f32 %v719_v12, %v156_v55  ;;  %v428_v8 = vadd.f32 %v713_v7, %v291_v57 }
  0x6b   :  { %535 = vst [vmem:[#allocation7 + $0x2c0] sm:$0xff] %v407_v61  ;;  %v158_v61 = vld [vmem:[#allocation2 + $0x388] sm:$0xff]  ;;  %v294_v2 = vmul.f32 %v707_v3, %v157_v58  ;;  %v429_v15 = vadd.f32 %v717_v10, %v292_v60 }
  0x6c   :  { %536 = vst [vmem:[#allocation7 + $0x2c8] sm:$0xff] %v408_v0  ;;  %v159_v0 = vld [vmem:[#allocation2 + $0x390] sm:$0xff]  ;;  %v295_v11 = vmul.f32 %v711_v6, %v158_v61  ;;  %v430_v18 = vadd.f32 %v721_v13, %v293_v63 }
  0x6d   :  { %537 = vst [vmem:[#allocation7 + $0x2d0] sm:$0xff] %v409_v5  ;;  %v160_v5 = vld [vmem:[#allocation2 + $0x398] sm:$0xff]  ;;  %v296_v16 = vmul.f32 %v715_v9, %v159_v0  ;;  %v431_v21 = vadd.f32 %v709_v4, %v294_v2 }
  0x6e   :  { %538 = vst [vmem:[#allocation7 + $0x2d8] sm:$0xff] %v410_v14  ;;  %v161_v14 = vld [vmem:[#allocation2 + $0x3a0] sm:$0xff]  ;;  %v297_v19 = vmul.f32 %v719_v12, %v160_v5  ;;  %v432_v24 = vadd.f32 %v713_v7, %v295_v11 }
  0x6f   :  { %539 = vst [vmem:[#allocation7 + $0x2e0] sm:$0xff] %v411_v17  ;;  %v162_v17 = vld [vmem:[#allocation2 + $0x3a8] sm:$0xff]  ;;  %v298_v22 = vmul.f32 %v707_v3, %v161_v14  ;;  %v433_v27 = vadd.f32 %v717_v10, %v296_v16 }
  0x70   :  { %540 = vst [vmem:[#allocation7 + $0x2e8] sm:$0xff] %v412_v20  ;;  %v163_v20 = vld [vmem:[#allocation2 + $0x3b0] sm:$0xff]  ;;  %v299_v25 = vmul.f32 %v711_v6, %v162_v17  ;;  %v434_v30 = vadd.f32 %v721_v13, %v297_v19 }
  0x71   :  { %541 = vst [vmem:[#allocation7 + $0x2f0] sm:$0xff] %v413_v23  ;;  %v164_v23 = vld [vmem:[#allocation2 + $0x3b8] sm:$0xff]  ;;  %v300_v28 = vmul.f32 %v715_v9, %v163_v20  ;;  %v435_v33 = vadd.f32 %v709_v4, %v298_v22 }
  0x72   :  { %542 = vst [vmem:[#allocation7 + $0x2f8] sm:$0xff] %v414_v26  ;;  %v165_v26 = vld [vmem:[#allocation2 + $0x3c0] sm:$0xff]  ;;  %v301_v31 = vmul.f32 %v719_v12, %v164_v23  ;;  %v436_v36 = vadd.f32 %v713_v7, %v299_v25 }
  0x73   :  { %543 = vst [vmem:[#allocation7 + $0x300] sm:$0xff] %v415_v29  ;;  %v166_v29 = vld [vmem:[#allocation2 + $0x3c8] sm:$0xff]  ;;  %v302_v34 = vmul.f32 %v707_v3, %v165_v26  ;;  %v437_v39 = vadd.f32 %v717_v10, %v300_v28 }
  0x74   :  { %544 = vst [vmem:[#allocation7 + $0x308] sm:$0xff] %v416_v32  ;;  %v167_v32 = vld [vmem:[#allocation2 + $0x3d0] sm:$0xff]  ;;  %v303_v37 = vmul.f32 %v711_v6, %v166_v29  ;;  %v438_v42 = vadd.f32 %v721_v13, %v301_v31 }
  0x75   :  { %545 = vst [vmem:[#allocation7 + $0x310] sm:$0xff] %v417_v35  ;;  %v168_v35 = vld [vmem:[#allocation2 + $0x3d8] sm:$0xff]  ;;  %v304_v40 = vmul.f32 %v715_v9, %v167_v32  ;;  %v439_v45 = vadd.f32 %v709_v4, %v302_v34 }
  0x76   :  { %546 = vst [vmem:[#allocation7 + $0x318] sm:$0xff] %v418_v38  ;;  %v169_v38 = vld [vmem:[#allocation2 + $0x3e0] sm:$0xff]  ;;  %v305_v43 = vmul.f32 %v719_v12, %v168_v35  ;;  %v440_v48 = vadd.f32 %v713_v7, %v303_v37 }
  0x77   :  { %547 = vst [vmem:[#allocation7 + $0x320] sm:$0xff] %v419_v41  ;;  %v170_v41 = vld [vmem:[#allocation2 + $0x3e8] sm:$0xff]  ;;  %v306_v46 = vmul.f32 %v707_v3, %v169_v38 }
  0x78   :  { %548 = vst [vmem:[#allocation7 + $0x328] sm:$0xff] %v420_v44  ;;  %v171_v44 = vld [vmem:[#allocation2 + $0x3f0] sm:$0xff]  ;;  %v307_v49 = vmul.f32 %v711_v6, %v170_v41  ;;  %v442_v52 = vadd.f32 %v721_v13, %v305_v43 }
  0x79   :  { %549 = vst [vmem:[#allocation7 + $0x330] sm:$0xff] %v421_v47  ;;  %v172_v47 = vld [vmem:[#allocation2 + $0x3f8] sm:$0xff]  ;;  %v308_v51 = vmul.f32 %v715_v9, %v171_v44  ;;  %v443_v54 = vadd.f32 %v709_v4, %v306_v46 }
  0x7a   :  { %550 = vst [vmem:[#allocation7 + $0x338] sm:$0xff] %v422_v50  ;;  %v441_v50 = vadd.f32 %v717_v10, %v304_v40  ;;  %v444_v3 = vadd.f32 %v713_v7, %v307_v49 }
  0x7b   :  { %551 = vst [vmem:[#allocation7 + $0x340] sm:$0xff] %v423_v53  ;;  %v309_v53 = vmul.f32 %v719_v12, %v172_v47  ;;  %v445_v55 = vadd.f32 %v717_v10, %v308_v51 }
  0x7c   :  { %552 = vst [vmem:[#allocation7 + $0x348] sm:$0xff] %v424_v56 }
  0x7d   :  { %553 = vst [vmem:[#allocation7 + $0x350] sm:$0xff] %v425_v59  ;;  %v446_v6 = vadd.f32 %v721_v13, %v309_v53 }
  0x7e   :  { %554 = vst [vmem:[#allocation7 + $0x358] sm:$0xff] %v426_v62 }
  0x7f   :  { %555 = vst [vmem:[#allocation7 + $0x360] sm:$0xff] %v427_v1 }
  0x80   :  { %556 = vst [vmem:[#allocation7 + $0x368] sm:$0xff] %v428_v8 }
  0x81   :  { %557 = vst [vmem:[#allocation7 + $0x370] sm:$0xff] %v429_v15 }
  0x82   :  { %558 = vst [vmem:[#allocation7 + $0x378] sm:$0xff] %v430_v18 }
  0x83   :  { %559 = vst [vmem:[#allocation7 + $0x380] sm:$0xff] %v431_v21 }
  0x84   :  { %560 = vst [vmem:[#allocation7 + $0x388] sm:$0xff] %v432_v24 }
  0x85   :  { %561 = vst [vmem:[#allocation7 + $0x390] sm:$0xff] %v433_v27 }
  0x86   :  { %562 = vst [vmem:[#allocation7 + $0x398] sm:$0xff] %v434_v30 }
  0x87   :  { %563 = vst [vmem:[#allocation7 + $0x3a0] sm:$0xff] %v435_v33 }
  0x88   :  { %564 = vst [vmem:[#allocation7 + $0x3a8] sm:$0xff] %v436_v36 }
  0x89   :  { %565 = vst [vmem:[#allocation7 + $0x3b0] sm:$0xff] %v437_v39 }
  0x8a   :  { %566 = vst [vmem:[#allocation7 + $0x3b8] sm:$0xff] %v438_v42 }
  0x8b   :  { %567 = vst [vmem:[#allocation7 + $0x3c0] sm:$0xff] %v439_v45 }
  0x8c   :  { %568 = vst [vmem:[#allocation7 + $0x3c8] sm:$0xff] %v440_v48 }
  0x8d   :  { %569 = vst [vmem:[#allocation7 + $0x3d0] sm:$0xff] %v441_v50 }
  0x8e   :  { %570 = vst [vmem:[#allocation7 + $0x3d8] sm:$0xff] %v442_v52 }
  0x8f   :  { %571 = vst [vmem:[#allocation7 + $0x3e0] sm:$0xff] %v443_v54 }
  0x90   :  { %572 = vst [vmem:[#allocation7 + $0x3e8] sm:$0xff] %v444_v3 }
  0x91   :  { %573 = vst [vmem:[#allocation7 + $0x3f0] sm:$0xff] %v445_v55 }
  0x92   :  { %574 = vst [vmem:[#allocation7 + $0x3f8] sm:$0xff] %v446_v6 }
  0x93   :  { %587 = dma.vmem_to_hbm [thread:$0]  %s580_s1, 16384, %s582_s23, [#allocation4], %s679_s17, %s679_s17, %s680_s18  }
  0x94   :  { %676 = dma.done.wait [#allocation4], 16384  }
  0x95   :  { %677 = vsyncadd [#allocation4], 4294950912 }
  0x96   :  { %592 = vsyncpa [#allocation3], 1 }
  0x97   :  { %593 = vsyncpa [#allocation6], 1 }
  0x98   :  { %594 = vsyncpa [#allocation4], 1 }

</bundles_post_ra>
